<compile_context>
chip_gen: v7x
topology: tpu7x:2x2x1
jax: 0.10.0
libtpu: 0.0.40
codegen_flags: <defaults>
</compile_context>

<pallas_src>
import functools

import jax
import jax.numpy as jnp
from jax.experimental import pallas as pl
from jax.experimental.pallas import tpu as pltpu

LANE = 128
SUBLANE = 8
LN_EPS = 1e-5


def _round_up(x, m):
    return ((x + m - 1) // m) * m


def _activation_kernel(y, actn_type):
    """In-kernel activation (f32 in, f32 out). EUP-lean rewrites for swish/mish."""
    if actn_type == 'relu':
        return jnp.maximum(y, 0.0)
    if actn_type == 'swish':
        # y * sigmoid(y) = y / (1 + exp(-y)); 1 exp + 1 approx reciprocal on EUP.
        e = jnp.exp(jnp.minimum(-y, 80.0))
        return y * pl.reciprocal(1.0 + e, approx=True)
    if actn_type == 'mish':
        # tanh(softplus(y)) == e*(e+2) / (e*(e+2) + 2), with e = exp(y).
        # Clamp y<=20 so e^2 stays finite in f32; for y>20 the ratio is ~1
        # (matching mish(y) ~= y), same as the exact formula.
        e = jnp.exp(jnp.minimum(y, 20.0))
        t = e * (e + 2.0)
        return y * (t * pl.reciprocal(t + 2.0, approx=True))
    raise ValueError(f"unsupported activation: {actn_type}")


def _activation_ref(y, actn_type):
    """Pure-JAX activation for the reference path (usable outside kernels)."""
    if actn_type == 'relu':
        return jnp.maximum(y, 0.0)
    if actn_type == 'swish':
        return y * jax.nn.sigmoid(y)
    if actn_type == 'mish':
        return y * jnp.tanh(jax.nn.softplus(y))
    raise ValueError(f"unsupported activation: {actn_type}")


def _fused_mlp_kernel(x_ref, *refs, layer_meta, use_norm, actn_type):
    """One batch tile through every (LN -> Linear -> act) layer + head.

    refs = [g0, b0, w0, bias0, g1, b1, w1, bias1, ..., o_ref]
    layer_meta[i] = (true_in_features, apply_activation)
    """
    o_ref = refs[-1]
    p_refs = refs[:-1]

    h = x_ref[...].astype(jnp.float32)           # (tb, F) f32 activations
    iota_cache = {}                              # hoisted: one iota per lane width

    for li, (fin_true, apply_act) in enumerate(layer_meta):
        g_ref, b_ref, w_ref, bias_ref = p_refs[4 * li: 4 * li + 4]
        fpad = h.shape[-1]

        if use_norm:
            # PyTorch LayerNorm (biased variance, eps inside rsqrt) over the TRUE
            # feature count. Padded lanes of h are exactly 0, so the unmasked sum
            # already gives the true-feature sum; only the variance term needs a
            # mask, and zero-padded gamma/beta force padded lanes back to 0.
            inv_n = 1.0 / float(fin_true)
            mean = jnp.sum(h, axis=-1, keepdims=True) * inv_n
            diff = h - mean
            if fin_true != fpad:
                if fpad not in iota_cache:
                    iota_cache[fpad] = jax.lax.broadcasted_iota(
                        jnp.int32, (1, fpad), 1)
                mask = (iota_cache[fpad] < fin_true).astype(jnp.float32)
                diff = diff * mask
            var = jnp.sum(diff * diff, axis=-1, keepdims=True) * inv_n
            h = diff * jax.lax.rsqrt(var + LN_EPS)
            h = h * g_ref[...].astype(jnp.float32) + b_ref[...].astype(jnp.float32)

        # Linear on the MXU: bf16 inputs, f32 accumulation. Zero-padded W rows /
        # cols and zero-padded bias keep padded output lanes exactly 0.
        y = jnp.dot(h.astype(jnp.bfloat16), w_ref[...],
                    preferred_element_type=jnp.float32)
        y = y + bias_ref[...].astype(jnp.float32)

        if apply_act:
            y = _activation_kernel(y, actn_type)
        # TODO(synk): nn.Dropout2d is stochastic only in train mode; this kernel
        # implements eval semantics (identity).
        h = y

    o_ref[...] = h.astype(o_ref.dtype)


def _choose_batch_tile(B, tb):
    """Batch tile: multiple of 8, <= tb, and >=2 grid steps for large batches
    so the "parallel" axis can shard across the 2 TensorCores on v7x."""
    tb = max(SUBLANE, (tb // SUBLANE) * SUBLANE)
    b8 = _round_up(B, SUBLANE)
    if b8 <= tb:
        return b8                     # single (possibly ragged) tile
    half = _round_up((b8 + 1) // 2, SUBLANE)
    return min(tb, half)


def mlp_forward(x, params, head, *, use_norm=True, classify=True,
                actn_type='relu', tb=512, out_dtype=None):
    """Fused forward pass. x: (B, in_features). Returns (B, out_features)."""
    B, F0 = x.shape
    layers = list(params) + ([head] if classify else [])
    act_flags = [True] * len(params) + ([False] if classify else [])

    fins = [p['w_t'].shape[0] for p in layers]
    fouts = [p['w_t'].shape[1] for p in layers]
    assert fins[0] == F0
    for i in range(len(layers) - 1):
        assert fins[i + 1] == fouts[i]

    # Lane layout: x keeps its TRUE feature width (read straight from HBM, no
    # wrapper pad pass); every layer OUTPUT is zero-padded up to 128 lanes so
    # matmuls / stores stay lane-dense. Later layers' weights pad their input
    # dim to match the 128-lane activations (zero rows => padded lanes stay 0).
    fins_pad = [F0] + [_round_up(f, LANE) for f in fins[1:]]
    fouts_pad = [_round_up(f, LANE) for f in fouts]

    tb_eff = _choose_batch_tile(B, tb)
    grid_b = pl.cdiv(B, tb_eff)       # ragged last block handled by Pallas;
                                      # all ops are row-independent.

    flat_inputs = [x]
    in_specs = [pl.BlockSpec((tb_eff, F0), lambda i: (i, 0))]
    for li, p in enumerate(layers):
        fi, fo = fins[li], fouts[li]
        fip, fop = fins_pad[li], fouts_pad[li]
        gamma = jnp.pad(p['gamma'].reshape(1, fi).astype(jnp.float32),
                        ((0, 0), (0, fip - fi)))
        beta = jnp.pad(p['beta'].reshape(1, fi).astype(jnp.float32),
                       ((0, 0), (0, fip - fi)))
        w = jnp.pad(p['w_t'].astype(jnp.bfloat16),
                    ((0, fip - fi), (0, fop - fo)))
        bias = jnp.pad(p['b'].reshape(1, fo).astype(jnp.float32),
                       ((0, 0), (0, fop - fo)))
        flat_inputs += [gamma, beta, w, bias]
        # Grid-invariant operands: constant index maps, whole-array blocks.
        # NOTE: for much wider hidden layers (esp. v7x, 64 MiB VMEM) add
        # pipeline_mode=pl.Buffered(1) here and/or tile W along Fout.
        in_specs += [
            pl.BlockSpec((1, fip), lambda i: (0, 0)),
            pl.BlockSpec((1, fip), lambda i: (0, 0)),
            pl.BlockSpec((fip, fop), lambda i: (0, 0)),
            pl.BlockSpec((1, fop), lambda i: (0, 0)),
        ]

    layer_meta = tuple((fins[li], act_flags[li]) for li in range(len(layers)))
    kernel = functools.partial(_fused_mlp_kernel, layer_meta=layer_meta,
                               use_norm=use_norm, actn_type=actn_type)

    out_dtype = x.dtype if out_dtype is None else out_dtype
    out_pad = pl.pallas_call(
        kernel,
        out_shape=jax.ShapeDtypeStruct((B, fouts_pad[-1]), out_dtype),
        grid=(grid_b,),
        in_specs=in_specs,
        out_specs=pl.BlockSpec((tb_eff, fouts_pad[-1]), lambda i: (i, 0)),
        compiler_params=pltpu.CompilerParams(
            dimension_semantics=("parallel",),
            vmem_limit_bytes=32 * 1024 * 1024),
    )(*flat_inputs)

    # Trailing lane slice only (batch dim is already unpadded).
    return out_pad[:, :fouts[-1]]


def init_mlp_params(key, in_features, layers, num_classes):
    """Deterministic parameter init mirroring the module's shapes (unpadded)."""
    params = []
    dims = [in_features] + list(layers)
    for i in range(len(layers)):
        fin, fout = dims[i], dims[i + 1]
        key, kw, kb = jax.random.split(key, 3)
        bound = 1.0 / float(fin) ** 0.5
        params.append(dict(
            gamma=jnp.ones((fin,), jnp.float32),
            beta=jnp.zeros((fin,), jnp.float32),
            # nn.Linear weight is (fout, fin); store its transpose (fin, fout).
            w_t=jax.random.uniform(kw, (fin, fout), jnp.float32, -bound, bound),
            b=jax.random.uniform(kb, (fout,), jnp.float32, -bound, bound),
        ))
    fin = layers[-1]
    key, kw, kb = jax.random.split(key, 3)
    bound = 1.0 / float(fin) ** 0.5
    head = dict(
        gamma=jnp.ones((fin,), jnp.float32),
        beta=jnp.zeros((fin,), jnp.float32),
        w_t=jax.random.uniform(kw, (fin, num_classes), jnp.float32, -bound, bound),
        b=jax.random.uniform(kb, (num_classes,), jnp.float32, -bound, bound),
    )
    return params, head


def mlp_reference(x, params, head, *, use_norm=True, classify=True,
                  actn_type='relu'):
    """Pure-JAX f32 reference of the PyTorch forward (eval mode)."""
    layers = list(params) + ([head] if classify else [])
    act_flags = [True] * len(params) + ([False] if classify else [])
    h = x.astype(jnp.float32)
    for p, act in zip(layers, act_flags):
        if use_norm:
            mean = jnp.mean(h, axis=-1, keepdims=True)
            var = jnp.mean((h - mean) ** 2, axis=-1, keepdims=True)
            h = (h - mean) * jax.lax.rsqrt(var + LN_EPS) * p['gamma'] + p['beta']
        h = h @ p['w_t'] + p['b']
        if act:
            h = _activation_ref(h, actn_type)
    return h


if __name__ == "__main__":
    # Small, forward-consistent shapes.
    batch = 64
    in_features = 32
    layers = [64, 32]
    num_classes = 14

    key = jax.random.PRNGKey(0)
    key, kx = jax.random.split(key)
    x = jax.random.normal(kx, (batch, in_features), jnp.float32)

    params, head = init_mlp_params(key, in_features, layers, num_classes)

    # relu (default path)
    out = mlp_forward(x, params, head, use_norm=True, classify=True,
                      actn_type='relu')
    out = jax.block_until_ready(out)
    assert out.shape == (batch, num_classes)
    ref = mlp_reference(x, params, head, use_norm=True, classify=True,
                        actn_type='relu')
    err = float(jnp.max(jnp.abs(out - ref)))
    assert err < 1e-1, f"relu: max abs error vs f32 reference: {err}"

    # swish / mish (exercise the EUP-lean activation rewrites)
    for actn in ('swish', 'mish'):
        out_a = jax.block_until_ready(
            mlp_forward(x, params, head, use_norm=True, classify=True,
                        actn_type=actn))
        ref_a = mlp_reference(x, params, head, use_norm=True, classify=True,
                              actn_type=actn)
        err_a = float(jnp.max(jnp.abs(out_a - ref_a)))
        assert err_a < 2e-1, f"{actn}: max abs error vs f32 reference: {err_a}"

    print("KERNEL_OK")
</pallas_src>

<mosaic_0001>
module attributes {stable_mosaic.version = 11 : i64} {
  func.func @_fused_mlp_kernel(%arg0: i32, %arg1: memref<64x32xf32, #tpu.memory_space<vmem>>, %arg2: memref<1x32xf32, #tpu.memory_space<vmem>>, %arg3: memref<1x32xf32, #tpu.memory_space<vmem>>, %arg4: memref<32x128xbf16, #tpu.memory_space<vmem>>, %arg5: memref<1x128xf32, #tpu.memory_space<vmem>>, %arg6: memref<1x128xf32, #tpu.memory_space<vmem>>, %arg7: memref<1x128xf32, #tpu.memory_space<vmem>>, %arg8: memref<128x128xbf16, #tpu.memory_space<vmem>>, %arg9: memref<1x128xf32, #tpu.memory_space<vmem>>, %arg10: memref<1x128xf32, #tpu.memory_space<vmem>>, %arg11: memref<1x128xf32, #tpu.memory_space<vmem>>, %arg12: memref<128x128xbf16, #tpu.memory_space<vmem>>, %arg13: memref<1x128xf32, #tpu.memory_space<vmem>>, %arg14: memref<64x128xf32, #tpu.memory_space<vmem>>) attributes {dimension_semantics = [#tpu.dimension_semantics<parallel>], iteration_bounds = array<i64: 1>, scalar_prefetch = 0 : i64, scratch_operands = 0 : i64, tpu.core_type = #tpu.core_type<tc>, window_params = [{transform_indices = @transform_0, window_bounds = array<i64: 64, 32>}, {pipeline_mode = #tpu.pipeline_mode<synchronous>, transform_indices = @transform_1, window_bounds = array<i64: 1, 32>}, {pipeline_mode = #tpu.pipeline_mode<synchronous>, transform_indices = @transform_2, window_bounds = array<i64: 1, 32>}, {pipeline_mode = #tpu.pipeline_mode<synchronous>, transform_indices = @transform_3, window_bounds = array<i64: 32, 128>}, {pipeline_mode = #tpu.pipeline_mode<synchronous>, transform_indices = @transform_4, window_bounds = array<i64: 1, 128>}, {pipeline_mode = #tpu.pipeline_mode<synchronous>, transform_indices = @transform_5, window_bounds = array<i64: 1, 128>}, {pipeline_mode = #tpu.pipeline_mode<synchronous>, transform_indices = @transform_6, window_bounds = array<i64: 1, 128>}, {pipeline_mode = #tpu.pipeline_mode<synchronous>, transform_indices = @transform_7, window_bounds = array<i64: 128, 128>}, {pipeline_mode = #tpu.pipeline_mode<synchronous>, transform_indices = @transform_8, window_bounds = array<i64: 1, 128>}, {pipeline_mode = #tpu.pipeline_mode<synchronous>, transform_indices = @transform_9, window_bounds = array<i64: 1, 128>}, {pipeline_mode = #tpu.pipeline_mode<synchronous>, transform_indices = @transform_10, window_bounds = array<i64: 1, 128>}, {pipeline_mode = #tpu.pipeline_mode<synchronous>, transform_indices = @transform_11, window_bounds = array<i64: 128, 128>}, {pipeline_mode = #tpu.pipeline_mode<synchronous>, transform_indices = @transform_12, window_bounds = array<i64: 1, 128>}, {transform_indices = @transform_13, window_bounds = array<i64: 64, 128>}]} {
    %c0 = arith.constant 0 : index
    %c0_0 = arith.constant 0 : index
    %0 = vector.load %arg1[%c0, %c0_0] : memref<64x32xf32, #tpu.memory_space<vmem>>, vector<64x32xf32>
    %cst = arith.constant dense<0.000000e+00> : vector<64xf32>
    %1 = vector.multi_reduction <add>, %0, %cst [1] : vector<64x32xf32> to vector<64xf32>
    %2 = vector.shape_cast %1 : vector<64xf32> to vector<64x1xf32>
    %cst_1 = arith.constant 3.125000e-02 : f32
    %3 = vector.broadcast %cst_1 : f32 to vector<64x1xf32>
    %4 = arith.mulf %2, %3 : vector<64x1xf32>
    %5 = vector.broadcast %4 : vector<64x1xf32> to vector<64x32xf32>
    %6 = arith.subf %0, %5 : vector<64x32xf32>
    %7 = arith.mulf %6, %6 : vector<64x32xf32>
    %cst_2 = arith.constant dense<0.000000e+00> : vector<64xf32>
    %8 = vector.multi_reduction <add>, %7, %cst_2 [1] : vector<64x32xf32> to vector<64xf32>
    %9 = vector.shape_cast %8 : vector<64xf32> to vector<64x1xf32>
    %cst_3 = arith.constant 3.125000e-02 : f32
    %10 = vector.broadcast %cst_3 : f32 to vector<64x1xf32>
    %11 = arith.mulf %9, %10 : vector<64x1xf32>
    %cst_4 = arith.constant 9.99999974E-6 : f32
    %12 = vector.broadcast %cst_4 : f32 to vector<64x1xf32>
    %13 = arith.addf %11, %12 : vector<64x1xf32>
    %14 = math.rsqrt %13 : vector<64x1xf32>
    %15 = vector.broadcast %14 : vector<64x1xf32> to vector<64x32xf32>
    %16 = arith.mulf %6, %15 : vector<64x32xf32>
    %c0_5 = arith.constant 0 : index
    %c0_6 = arith.constant 0 : index
    %17 = vector.load %arg2[%c0_5, %c0_6] : memref<1x32xf32, #tpu.memory_space<vmem>>, vector<1x32xf32>
    %18 = vector.broadcast %17 : vector<1x32xf32> to vector<64x32xf32>
    %19 = arith.mulf %16, %18 : vector<64x32xf32>
    %c0_7 = arith.constant 0 : index
    %c0_8 = arith.constant 0 : index
    %20 = vector.load %arg3[%c0_7, %c0_8] : memref<1x32xf32, #tpu.memory_space<vmem>>, vector<1x32xf32>
    %21 = vector.broadcast %20 : vector<1x32xf32> to vector<64x32xf32>
    %22 = arith.addf %19, %21 : vector<64x32xf32>
    %23 = arith.truncf %22 : vector<64x32xf32> to vector<64x32xbf16>
    %c0_9 = arith.constant 0 : index
    %c0_10 = arith.constant 0 : index
    %24 = vector.load %arg4[%c0_9, %c0_10] : memref<32x128xbf16, #tpu.memory_space<vmem>>, vector<32x128xbf16>
    %cst_11 = arith.constant dense<0.000000e+00> : vector<64x128xf32>
    %25 = tpu.matmul %23, %24, %cst_11 {dimension_numbers = #tpu.dot_dimension_numbers<[1], [0], [0], [1], [0, 0, 1, 1], [], []>} : vector<64x32xbf16>, vector<32x128xbf16>, vector<64x128xf32> -> vector<64x128xf32>
    %c0_12 = arith.constant 0 : index
    %c0_13 = arith.constant 0 : index
    %26 = vector.load %arg5[%c0_12, %c0_13] : memref<1x128xf32, #tpu.memory_space<vmem>>, vector<1x128xf32>
    %27 = vector.broadcast %26 : vector<1x128xf32> to vector<64x128xf32>
    %28 = arith.addf %25, %27 : vector<64x128xf32>
    %cst_14 = arith.constant 0.000000e+00 : f32
    %29 = vector.broadcast %cst_14 : f32 to vector<64x128xf32>
    %30 = arith.maximumf %28, %29 : vector<64x128xf32>
    %cst_15 = arith.constant dense<0.000000e+00> : vector<64xf32>
    %31 = vector.multi_reduction <add>, %30, %cst_15 [1] : vector<64x128xf32> to vector<64xf32>
    %32 = vector.shape_cast %31 : vector<64xf32> to vector<64x1xf32>
    %cst_16 = arith.constant 1.562500e-02 : f32
    %33 = vector.broadcast %cst_16 : f32 to vector<64x1xf32>
    %34 = arith.mulf %32, %33 : vector<64x1xf32>
    %35 = vector.broadcast %34 : vector<64x1xf32> to vector<64x128xf32>
    %36 = arith.subf %30, %35 : vector<64x128xf32>
    %37 = tpu.iota {dimensions = array<i32: 1>} : vector<1x128xi32>
    %c64_i32 = arith.constant 64 : i32
    %38 = vector.broadcast %c64_i32 : i32 to vector<1x128xi32>
    %39 = arith.cmpi slt, %37, %38 : vector<1x128xi32>
    %40 = arith.extui %39 : vector<1x128xi1> to vector<1x128xi32>
    %41 = arith.sitofp %40 : vector<1x128xi32> to vector<1x128xf32>
    %42 = vector.broadcast %41 : vector<1x128xf32> to vector<64x128xf32>
    %43 = arith.mulf %36, %42 : vector<64x128xf32>
    %44 = arith.mulf %43, %43 : vector<64x128xf32>
    %cst_17 = arith.constant dense<0.000000e+00> : vector<64xf32>
    %45 = vector.multi_reduction <add>, %44, %cst_17 [1] : vector<64x128xf32> to vector<64xf32>
    %46 = vector.shape_cast %45 : vector<64xf32> to vector<64x1xf32>
    %cst_18 = arith.constant 1.562500e-02 : f32
    %47 = vector.broadcast %cst_18 : f32 to vector<64x1xf32>
    %48 = arith.mulf %46, %47 : vector<64x1xf32>
    %cst_19 = arith.constant 9.99999974E-6 : f32
    %49 = vector.broadcast %cst_19 : f32 to vector<64x1xf32>
    %50 = arith.addf %48, %49 : vector<64x1xf32>
    %51 = math.rsqrt %50 : vector<64x1xf32>
    %52 = vector.broadcast %51 : vector<64x1xf32> to vector<64x128xf32>
    %53 = arith.mulf %43, %52 : vector<64x128xf32>
    %c0_20 = arith.constant 0 : index
    %c0_21 = arith.constant 0 : index
    %54 = vector.load %arg6[%c0_20, %c0_21] : memref<1x128xf32, #tpu.memory_space<vmem>>, vector<1x128xf32>
    %55 = vector.broadcast %54 : vector<1x128xf32> to vector<64x128xf32>
    %56 = arith.mulf %53, %55 : vector<64x128xf32>
    %c0_22 = arith.constant 0 : index
    %c0_23 = arith.constant 0 : index
    %57 = vector.load %arg7[%c0_22, %c0_23] : memref<1x128xf32, #tpu.memory_space<vmem>>, vector<1x128xf32>
    %58 = vector.broadcast %57 : vector<1x128xf32> to vector<64x128xf32>
    %59 = arith.addf %56, %58 : vector<64x128xf32>
    %60 = arith.truncf %59 : vector<64x128xf32> to vector<64x128xbf16>
    %c0_24 = arith.constant 0 : index
    %c0_25 = arith.constant 0 : index
    %61 = vector.load %arg8[%c0_24, %c0_25] : memref<128x128xbf16, #tpu.memory_space<vmem>>, vector<128x128xbf16>
    %cst_26 = arith.constant dense<0.000000e+00> : vector<64x128xf32>
    %62 = tpu.matmul %60, %61, %cst_26 {dimension_numbers = #tpu.dot_dimension_numbers<[1], [0], [0], [1], [0, 0, 1, 1], [], []>} : vector<64x128xbf16>, vector<128x128xbf16>, vector<64x128xf32> -> vector<64x128xf32>
    %c0_27 = arith.constant 0 : index
    %c0_28 = arith.constant 0 : index
    %63 = vector.load %arg9[%c0_27, %c0_28] : memref<1x128xf32, #tpu.memory_space<vmem>>, vector<1x128xf32>
    %64 = vector.broadcast %63 : vector<1x128xf32> to vector<64x128xf32>
    %65 = arith.addf %62, %64 : vector<64x128xf32>
    %cst_29 = arith.constant 0.000000e+00 : f32
    %66 = vector.broadcast %cst_29 : f32 to vector<64x128xf32>
    %67 = arith.maximumf %65, %66 : vector<64x128xf32>
    %cst_30 = arith.constant dense<0.000000e+00> : vector<64xf32>
    %68 = vector.multi_reduction <add>, %67, %cst_30 [1] : vector<64x128xf32> to vector<64xf32>
    %69 = vector.shape_cast %68 : vector<64xf32> to vector<64x1xf32>
    %cst_31 = arith.constant 3.125000e-02 : f32
    %70 = vector.broadcast %cst_31 : f32 to vector<64x1xf32>
    %71 = arith.mulf %69, %70 : vector<64x1xf32>
    %72 = vector.broadcast %71 : vector<64x1xf32> to vector<64x128xf32>
    %73 = arith.subf %67, %72 : vector<64x128xf32>
    %c32_i32 = arith.constant 32 : i32
    %74 = vector.broadcast %c32_i32 : i32 to vector<1x128xi32>
    %75 = arith.cmpi slt, %37, %74 : vector<1x128xi32>
    %76 = arith.extui %75 : vector<1x128xi1> to vector<1x128xi32>
    %77 = arith.sitofp %76 : vector<1x128xi32> to vector<1x128xf32>
    %78 = vector.broadcast %77 : vector<1x128xf32> to vector<64x128xf32>
    %79 = arith.mulf %73, %78 : vector<64x128xf32>
    %80 = arith.mulf %79, %79 : vector<64x128xf32>
    %cst_32 = arith.constant dense<0.000000e+00> : vector<64xf32>
    %81 = vector.multi_reduction <add>, %80, %cst_32 [1] : vector<64x128xf32> to vector<64xf32>
    %82 = vector.shape_cast %81 : vector<64xf32> to vector<64x1xf32>
    %cst_33 = arith.constant 3.125000e-02 : f32
    %83 = vector.broadcast %cst_33 : f32 to vector<64x1xf32>
    %84 = arith.mulf %82, %83 : vector<64x1xf32>
    %cst_34 = arith.constant 9.99999974E-6 : f32
    %85 = vector.broadcast %cst_34 : f32 to vector<64x1xf32>
    %86 = arith.addf %84, %85 : vector<64x1xf32>
    %87 = math.rsqrt %86 : vector<64x1xf32>
    %88 = vector.broadcast %87 : vector<64x1xf32> to vector<64x128xf32>
    %89 = arith.mulf %79, %88 : vector<64x128xf32>
    %c0_35 = arith.constant 0 : index
    %c0_36 = arith.constant 0 : index
    %90 = vector.load %arg10[%c0_35, %c0_36] : memref<1x128xf32, #tpu.memory_space<vmem>>, vector<1x128xf32>
    %91 = vector.broadcast %90 : vector<1x128xf32> to vector<64x128xf32>
    %92 = arith.mulf %89, %91 : vector<64x128xf32>
    %c0_37 = arith.constant 0 : index
    %c0_38 = arith.constant 0 : index
    %93 = vector.load %arg11[%c0_37, %c0_38] : memref<1x128xf32, #tpu.memory_space<vmem>>, vector<1x128xf32>
    %94 = vector.broadcast %93 : vector<1x128xf32> to vector<64x128xf32>
    %95 = arith.addf %92, %94 : vector<64x128xf32>
    %96 = arith.truncf %95 : vector<64x128xf32> to vector<64x128xbf16>
    %c0_39 = arith.constant 0 : index
    %c0_40 = arith.constant 0 : index
    %97 = vector.load %arg12[%c0_39, %c0_40] : memref<128x128xbf16, #tpu.memory_space<vmem>>, vector<128x128xbf16>
    %cst_41 = arith.constant dense<0.000000e+00> : vector<64x128xf32>
    %98 = tpu.matmul %96, %97, %cst_41 {dimension_numbers = #tpu.dot_dimension_numbers<[1], [0], [0], [1], [0, 0, 1, 1], [], []>} : vector<64x128xbf16>, vector<128x128xbf16>, vector<64x128xf32> -> vector<64x128xf32>
    %c0_42 = arith.constant 0 : index
    %c0_43 = arith.constant 0 : index
    %99 = vector.load %arg13[%c0_42, %c0_43] : memref<1x128xf32, #tpu.memory_space<vmem>>, vector<1x128xf32>
    %100 = vector.broadcast %99 : vector<1x128xf32> to vector<64x128xf32>
    %101 = arith.addf %98, %100 : vector<64x128xf32>
    %c0_44 = arith.constant 0 : index
    %c0_45 = arith.constant 0 : index
    %102 = vector.load %arg14[%c0_44, %c0_45] : memref<64x128xf32, #tpu.memory_space<vmem>>, vector<64x128xf32>
    tpu.vector_store %arg14[%c0_44, %c0_45], %101 {strides = array<i32>} : memref<64x128xf32, #tpu.memory_space<vmem>>, vector<64x128xf32>,
    return
  }
  func.func @transform_0(%arg0: i32) -> (i32, i32) {
    %c0_i32 = arith.constant 0 : i32
    %c0_i32_0 = arith.constant 0 : i32
    return %arg0, %c0_i32 : i32, i32
  }
  func.func @transform_1(%arg0: i32) -> (i32, i32) {
    %c0_i32 = arith.constant 0 : i32
    %c0_i32_0 = arith.constant 0 : i32
    %c0_i32_1 = arith.constant 0 : i32
    return %c0_i32, %c0_i32_0 : i32, i32
  }
  func.func @transform_2(%arg0: i32) -> (i32, i32) {
    %c0_i32 = arith.constant 0 : i32
    %c0_i32_0 = arith.constant 0 : i32
    %c0_i32_1 = arith.constant 0 : i32
    return %c0_i32, %c0_i32_0 : i32, i32
  }
  func.func @transform_3(%arg0: i32) -> (i32, i32) {
    %c0_i32 = arith.constant 0 : i32
    %c0_i32_0 = arith.constant 0 : i32
    %c0_i32_1 = arith.constant 0 : i32
    return %c0_i32, %c0_i32_0 : i32, i32
  }
  func.func @transform_4(%arg0: i32) -> (i32, i32) {
    %c0_i32 = arith.constant 0 : i32
    %c0_i32_0 = arith.constant 0 : i32
    %c0_i32_1 = arith.constant 0 : i32
    return %c0_i32, %c0_i32_0 : i32, i32
  }
  func.func @transform_5(%arg0: i32) -> (i32, i32) {
    %c0_i32 = arith.constant 0 : i32
    %c0_i32_0 = arith.constant 0 : i32
    %c0_i32_1 = arith.constant 0 : i32
    return %c0_i32, %c0_i32_0 : i32, i32
  }
  func.func @transform_6(%arg0: i32) -> (i32, i32) {
    %c0_i32 = arith.constant 0 : i32
    %c0_i32_0 = arith.constant 0 : i32
    %c0_i32_1 = arith.constant 0 : i32
    return %c0_i32, %c0_i32_0 : i32, i32
  }
  func.func @transform_7(%arg0: i32) -> (i32, i32) {
    %c0_i32 = arith.constant 0 : i32
    %c0_i32_0 = arith.constant 0 : i32
    %c0_i32_1 = arith.constant 0 : i32
    return %c0_i32, %c0_i32_0 : i32, i32
  }
  func.func @transform_8(%arg0: i32) -> (i32, i32) {
    %c0_i32 = arith.constant 0 : i32
    %c0_i32_0 = arith.constant 0 : i32
    %c0_i32_1 = arith.constant 0 : i32
    return %c0_i32, %c0_i32_0 : i32, i32
  }
  func.func @transform_9(%arg0: i32) -> (i32, i32) {
    %c0_i32 = arith.constant 0 : i32
    %c0_i32_0 = arith.constant 0 : i32
    %c0_i32_1 = arith.constant 0 : i32
    return %c0_i32, %c0_i32_0 : i32, i32
  }
  func.func @transform_10(%arg0: i32) -> (i32, i32) {
    %c0_i32 = arith.constant 0 : i32
    %c0_i32_0 = arith.constant 0 : i32
    %c0_i32_1 = arith.constant 0 : i32
    return %c0_i32, %c0_i32_0 : i32, i32
  }
  func.func @transform_11(%arg0: i32) -> (i32, i32) {
    %c0_i32 = arith.constant 0 : i32
    %c0_i32_0 = arith.constant 0 : i32
    %c0_i32_1 = arith.constant 0 : i32
    return %c0_i32, %c0_i32_0 : i32, i32
  }
  func.func @transform_12(%arg0: i32) -> (i32, i32) {
    %c0_i32 = arith.constant 0 : i32
    %c0_i32_0 = arith.constant 0 : i32
    %c0_i32_1 = arith.constant 0 : i32
    return %c0_i32, %c0_i32_0 : i32, i32
  }
  func.func @transform_13(%arg0: i32) -> (i32, i32) {
    %c0_i32 = arith.constant 0 : i32
    %c0_i32_0 = arith.constant 0 : i32
    return %arg0, %c0_i32 : i32, i32
  }
}

</mosaic_0001>

<bundles_post_ra>
// kernel: tpu_custom_call.1
= control target key start
LH: loop header
LB: loop body
LE: loop exit
PB: predicated region body
PF: predicated region fallthrough
CT: control target
= control target key end

     0   :  { %18 = vsyncpa [#allocation3], 0  ;;  %s1710_s0 = inlined_call_operand.vmem [shape: f32[64,32], index: 0, kind: input, shape index: {}]   ;;  %s1711_s1 = inlined_call_operand.vmem [shape: f32[1,32], index: 1, kind: input, shape index: {}]   ;;  %s1712_s2 = inlined_call_operand.vmem [shape: f32[1,32], index: 2, kind: input, shape index: {}]   ;;  %s1713_s3 = inlined_call_operand.hbm [shape: bf16[32,128], index: 3, kind: input, shape index: {}]   ;;  %s1714_s4 = inlined_call_operand.hbm [shape: f32[1,128], index: 4, kind: input, shape index: {}]   ;;  %s1715_s5 = inlined_call_operand.hbm [shape: f32[1,128], index: 5, kind: input, shape index: {}]   ;;  %s1716_s6 = inlined_call_operand.hbm [shape: f32[1,128], index: 6, kind: input, shape index: {}]   ;;  %s1717_s7 = inlined_call_operand.vmem [shape: bf16[128,128], index: 7, kind: input, shape index: {}]   ;;  %s1718_s8 = inlined_call_operand.hbm [shape: f32[1,128], index: 8, kind: input, shape index: {}]   ;;  %s1719_s9 = inlined_call_operand.hbm [shape: f32[1,128], index: 9, kind: input, shape index: {}]   ;;  %s1720_s10 = inlined_call_operand.vmem [shape: f32[1,128], index: 10, kind: input, shape index: {}]   ;;  %s1721_s11 = inlined_call_operand.vmem [shape: bf16[128,128], index: 11, kind: input, shape index: {}]   ;;  %s1722_s12 = inlined_call_operand.vmem [shape: f32[1,128], index: 12, kind: input, shape index: {}]   ;;  %s1723_s13 = inlined_call_operand.hbm [shape: f32[64,128], index: 13, kind: output, shape index: {}]  }
   0x1   :  { %19 = vsyncpa [#allocation6], 0 }
   0x2   :  { %20 = vsyncpa [#allocation9], 0 }
   0x3   :  { %21 = vsyncpa [#allocation12], 0 }
   0x4   :  { %22 = vsyncpa [#allocation4], 0  ;;  %s1314_s25 = smov [#allocation5]   ;;  %s1315_s27 = smov [#allocation8]  }
   0x5   :  { %s47_s26 = sshll.u32 %s1314_s25, 4  ;;  %s67_s28 = sshll.u32 %s1315_s27, 4  ;;  %s48_s26 = int_to_ptr.vmem [resolvable:$true] %s47_s26  ;;  %s68_s28 = int_to_ptr.vmem [resolvable:$true] %s67_s28 }
   0x6   :  { %s1150_s14 = scalar_lea.hbm %s1714_s4, 16 }
   0x7   :  { %p1151_p0 = scmp.ne.s32.totalorder %s1714_s4, %s1150_s14  ;;  %p1154_p1 = scmp.lt.u32.totalorder %s1150_s14, %s1714_s4 }
   0x9   :  { %p1156_p2 = pnand %p1154_p1, %p1151_p0 }
   0xb   :  { %1159 = shalt.err (!%p1156_p2)
}
   0xc   :  { %s1160_s19 = scalar_lea.vmem %s48_s26, 16  ;;  %s1164_s20 = scalar_lea.vmem %s48_s26, 32 }
   0xd   :  { %p1161_p3 = scmp.ne.s32.totalorder %s48_s26, %s1160_s19  ;;  %p1165_p4 = scmp.lt.s32.totalorder %s48_s26, %s48_s26 }
   0xe   :  { %p1166_p5 = scmp.lt.s32.totalorder %s1164_s20, %s1160_s19 }
  0x10   :  { %p1167_p6 = por %p1166_p5, %p1165_p4 }
  0x12   :  { %p1168_p7 = pnand %p1167_p6, %p1161_p3 }
  0x14   :  { %1171 = shalt.err (!%p1168_p7)
}
  0x15   :  { %50 = dma.hbm_to_vmem [thread:$0]  %s1714_s4, 16, %s48_s26, [#allocation6]  }
  0x16   :  { %s1172_s25 = scalar_lea.hbm %s1716_s6, 16 }
  0x17   :  { %p1173_p8 = scmp.ne.s32.totalorder %s1716_s6, %s1172_s25  ;;  %p1176_p9 = scmp.lt.u32.totalorder %s1172_s25, %s1716_s6 }
  0x19   :  { %p1178_p10 = pnand %p1176_p9, %p1173_p8 }
  0x1b   :  { %1181 = shalt.err (!%p1178_p10)
}
  0x1c   :  { %s1182_s15 = scalar_lea.vmem %s68_s28, 16  ;;  %s1186_s16 = scalar_lea.vmem %s68_s28, 32 }
  0x1d   :  { %p1183_p11 = scmp.ne.s32.totalorder %s68_s28, %s1182_s15  ;;  %p1187_p12 = scmp.lt.s32.totalorder %s68_s28, %s68_s28 }
  0x1e   :  { %p1188_p13 = scmp.lt.s32.totalorder %s1186_s16, %s1182_s15 }
  0x20   :  { %p1189_p0 = por %p1188_p13, %p1187_p12 }
  0x22   :  { %p1190_p1 = pnand %p1189_p0, %p1183_p11 }
  0x24   :  { %1193 = shalt.err (!%p1190_p1)
}
  0x25   :  { %70 = dma.hbm_to_vmem [thread:$0]  %s1716_s6, 16, %s68_s28, [#allocation9]  }
  0x26   :  { %s1316_s17 = smov [#allocation2]   ;;  %s1194_s21 = scalar_lea.hbm %s1713_s3, 256 }
  0x27   :  { %s34_s18 = sshll.u32 %s1316_s17, 4  ;;  %p1195_p2 = scmp.ne.s32.totalorder %s1713_s3, %s1194_s21  ;;  %s35_s18 = int_to_ptr.vmem [resolvable:$true] %s34_s18 }
  0x28   :  { %p1198_p3 = scmp.lt.u32.totalorder %s1194_s21, %s1713_s3 }
  0x2a   :  { %p1200_p4 = pnand %p1198_p3, %p1195_p2 }
  0x2c   :  { %1203 = shalt.err (!%p1200_p4)
}
  0x2d   :  { %s1204_s27 = scalar_lea.vmem %s35_s18, 256  ;;  %p1209_p6 = scmp.lt.s32.totalorder %s35_s18, %s35_s18 }
  0x2e   :  { %p1205_p5 = scmp.ne.s32.totalorder %s35_s18, %s1204_s27  ;;  %p1210_p7 = scmp.lt.s32.totalorder %s1204_s27, %s1204_s27 }
  0x30   :  { %p1211_p8 = por %p1210_p7, %p1209_p6 }
  0x32   :  { %p1212_p9 = pnand %p1211_p8, %p1205_p5 }
  0x34   :  { %1215 = shalt.err (!%p1212_p9)
}
  0x35   :  { %s1317_s6 = smov 64   ;;  %s1318_s28 = smov 4  }
  0x36   :  { %40 = dma.hbm_to_vmem [thread:$0]  %s1713_s3, 256, %s35_s18, [#allocation3], %s1317_s6, %s1317_s6, %s1318_s28  }
  0x37   :  { %s1319_s14 = smov [#allocation7]   ;;  %s1320_s16 = smov [#allocation10]  }
  0x38   :  { %s57_s15 = sshll.u32 %s1319_s14, 4  ;;  %s79_s4 = sshll.u32 %s1320_s16, 4  ;;  %s58_s15 = int_to_ptr.vmem [resolvable:$true] %s57_s15  ;;  %s80_s4 = int_to_ptr.vmem [resolvable:$true] %s79_s4 }
  0x39   :  { %s1216_s19 = scalar_lea.hbm %s1715_s5, 16 }
  0x3a   :  { %p1217_p10 = scmp.ne.s32.totalorder %s1715_s5, %s1216_s19  ;;  %p1220_p11 = scmp.lt.u32.totalorder %s1216_s19, %s1715_s5 }
  0x3c   :  { %p1222_p12 = pnand %p1220_p11, %p1217_p10 }
  0x3e   :  { %1225 = shalt.err (!%p1222_p12)
}
  0x3f   :  { %s1226_s3 = scalar_lea.vmem %s58_s15, 16  ;;  %s1230_s18 = scalar_lea.vmem %s58_s15, 32 }
  0x40   :  { %p1227_p13 = scmp.ne.s32.totalorder %s58_s15, %s1226_s3  ;;  %p1231_p0 = scmp.lt.s32.totalorder %s58_s15, %s58_s15 }
  0x41   :  { %p1232_p1 = scmp.lt.s32.totalorder %s1230_s18, %s1226_s3 }
  0x43   :  { %p1233_p2 = por %p1232_p1, %p1231_p0 }
  0x45   :  { %p1234_p3 = pnand %p1233_p2, %p1227_p13 }
  0x47   :  { %1237 = shalt.err (!%p1234_p3)
}
  0x48   :  { %60 = dma.hbm_to_vmem [thread:$0]  %s1715_s5, 16, %s58_s15, [#allocation6]  }
  0x49   :  { %s1238_s28 = scalar_lea.hbm %s1718_s8, 16 }
  0x4a   :  { %p1239_p4 = scmp.ne.s32.totalorder %s1718_s8, %s1238_s28  ;;  %p1242_p5 = scmp.lt.u32.totalorder %s1238_s28, %s1718_s8 }
  0x4c   :  { %p1244_p6 = pnand %p1242_p5, %p1239_p4 }
  0x4e   :  { %1247 = shalt.err (!%p1244_p6)
}
  0x4f   :  { %s1248_s26 = scalar_lea.vmem %s80_s4, 16  ;;  %s1252_s17 = scalar_lea.vmem %s80_s4, 32 }
  0x50   :  { %p1249_p7 = scmp.ne.s32.totalorder %s80_s4, %s1248_s26  ;;  %p1253_p8 = scmp.lt.s32.totalorder %s80_s4, %s80_s4 }
  0x51   :  { %p1254_p9 = scmp.lt.s32.totalorder %s1252_s17, %s1248_s26 }
  0x53   :  { %p1255_p10 = por %p1254_p9, %p1253_p8 }
  0x55   :  { %p1256_p11 = pnand %p1255_p10, %p1249_p7 }
  0x57   :  { %1259 = shalt.err (!%p1256_p11)
}
  0x58   :  { %82 = dma.hbm_to_vmem [thread:$0]  %s1718_s8, 16, %s80_s4, [#allocation9]  }
  0x59   :  { %s1321_s19 = smov [#allocation11]   ;;  %s1260_s23 = scalar_lea.hbm %s1719_s9, 16 }
  0x5a   :  { %s89_s20 = sshll.u32 %s1321_s19, 4  ;;  %p1261_p12 = scmp.ne.s32.totalorder %s1719_s9, %s1260_s23  ;;  %s90_s20 = int_to_ptr.vmem [resolvable:$true] %s89_s20 }
  0x5b   :  { %p1264_p13 = scmp.lt.u32.totalorder %s1260_s23, %s1719_s9 }
  0x5d   :  { %p1266_p0 = pnand %p1264_p13, %p1261_p12 }
  0x5f   :  { %1269 = shalt.err (!%p1266_p0)
}
  0x60   :  { %s1270_s27 = scalar_lea.vmem %s90_s20, 16  ;;  %s1274_s8 = scalar_lea.vmem %s90_s20, 32 }
  0x61   :  { %p1271_p1 = scmp.ne.s32.totalorder %s90_s20, %s1270_s27  ;;  %p1275_p2 = scmp.lt.s32.totalorder %s90_s20, %s90_s20 }
  0x62   :  { %p1276_p3 = scmp.lt.s32.totalorder %s1274_s8, %s1270_s27 }
  0x64   :  { %p1277_p4 = por %p1276_p3, %p1275_p2 }
  0x66   :  { %p1278_p5 = pnand %p1277_p4, %p1271_p1 }
  0x68   :  { %1281 = shalt.err (!%p1278_p5)
}
  0x69   :  { %92 = dma.hbm_to_vmem [thread:$0]  %s1719_s9, 16, %s90_s20, [#allocation12]  }
  0x6a   :  { %1304 = dma.done.wait [#allocation3], 256  }
  0x6b   :  { %1305 = vsyncadd [#allocation3], 4294967040 }
  0x6c   :  { %1306 = dma.done.wait [#allocation6], 32  }
  0x6d   :  { %1307 = vsyncadd [#allocation6], 4294967264 }
  0x6e   :  { %1308 = dma.done.wait [#allocation9], 32  }
  0x6f   :  { %1309 = vsyncadd [#allocation9], 4294967264 }
  0x70   :  { %1310 = dma.done.wait [#allocation12], 16  }
  0x71   :  { %1311 = vsyncadd [#allocation12], 4294967280  ;;  %vm126_vm0 = vcmask 261120   ;;  %v118_v0 = vld [vmem:[%s1710_s0] sm:$0xff]  ;;  %v120_v1 = vld [vmem:[%s1710_s0 + $0x10] sm:$0xff]  ;;  %s1323_s29 = smov [#allocation13]  }
  0x72   :  { %v119_v2 = vld [vmem:[%s1710_s0 + $0x8] sm:$0xff]  ;;  %v127_v3 = vsel %vm126_vm0, %v118_v0, 0.0  ;;  %v133_v4 = vsel %vm126_vm0, %v120_v1, 0.0  ;;  %v121_v5 = vld [vmem:[%s1710_s0 + $0x18] sm:$0xff]  ;;  %v122_v6 = vld [vmem:[%s1710_s0 + $0x20] sm:$0xff]  ;;  %s934_s30 = sshll.u32 %s1323_s29, 4  ;;  %s935_s30 = int_to_ptr.vmem [resolvable:$true] %s934_s30 }
  0x73   :  { %v123_v7 = vld [vmem:[%s1710_s0 + $0x28] sm:$0xff]  ;;  %128 = vadd.xlane.f32.xlu0 %v127_v3  ;;  %134 = vadd.xlane.f32.xlu1 %v133_v4  ;;  %v130_v8 = vsel %vm126_vm0, %v119_v2, 0.0  ;;  %v136_v9 = vsel %vm126_vm0, %v121_v5, 0.0  ;;  %v139_v10 = vsel %vm126_vm0, %v122_v6, 0.0  ;;  %v124_v12 = vld [vmem:[%s1710_s0 + $0x30] sm:$0xff]  ;;  %v125_v13 = vld [vmem:[%s1710_s0 + $0x38] sm:$0xff]  ;;  %p1287_p7 = scmp.lt.s32.totalorder %s935_s30, %s935_s30 }
  0x74   :  { %v142_v11 = vsel %vm126_vm0, %v123_v7, 0.0  ;;  %v145_v14 = vsel %vm126_vm0, %v124_v12, 0.0  ;;  %v148_v15 = vsel %vm126_vm0, %v125_v13, 0.0  ;;  %v1084_v56 = vld [vmem:[#allocation2] sm:$0xff]   ;;  %v1085_v57 = vld [vmem:[#allocation2 + $0x8] sm:$0xff]  }
  0x75   :  { %1012 = vmatprep.subr.bf16.mxu0 %v1084_v56 }
  0x76   :  { %1013 = vmatpush3.bf16.msra.mxu0 %v1084_v56 }
  0x77   :  { %131 = vadd.xlane.f32.xlu0 %v130_v8  ;;  %137 = vadd.xlane.f32.xlu1 %v136_v9 }
  0x78   :  { %1014 = vmatprep.subr.bf16.mxu0 %v1085_v57 }
  0x7a   :  { %1015 = vmatpush3.bf16.msra.mxu0 %v1085_v57 }
  0x7b   :  { %140 = vadd.xlane.f32.xlu0 %v139_v10  ;;  %143 = vadd.xlane.f32.xlu1 %v142_v11 }
  0x7f   :  { %146 = vadd.xlane.f32.xlu0 %v145_v14  ;;  %149 = vadd.xlane.f32.xlu1 %v148_v15 }
 0x100   :  { %v129_v16 = vpop.xlane.xlu0 %128  ;;  %v135_v17 = vpop.xlane.xlu1 %134 }
 0x101   :  { %v151_v18 = vmul.f32 0.03125, %v129_v16  ;;  %v153_v19 = vmul.f32 0.03125, %v135_v17 }
 0x103   :  { %v1500_v20 = vsub.f32 %v118_v0, %v151_v18  ;;  %v1502_v21 = vsub.f32 %v120_v1, %v153_v19  ;;  %v949_v19 = vld [vmem:[%s1711_s1] ss:$0 sm:$0xff] }
 0x104   :  { %v132_v22 = vpop.xlane.xlu0 %131  ;;  %v138_v23 = vpop.xlane.xlu1 %137 }
 0x105   :  { %v152_v24 = vmul.f32 0.03125, %v132_v22  ;;  %v154_v25 = vmul.f32 0.03125, %v138_v23  ;;  %v167_v26 = vmul.f32 %v1500_v20, %v1500_v20  ;;  %v169_v27 = vmul.f32 %v1502_v21, %v1502_v21 }
 0x107   :  { %v1508_v28 = vsub.f32 %v119_v2, %v152_v24  ;;  %v1510_v29 = vsub.f32 %v121_v5, %v154_v25  ;;  %v175_v30 = vsel %vm126_vm0, %v167_v26, 0.0  ;;  %v181_v33 = vsel %vm126_vm0, %v169_v27, 0.0 }
 0x108   :  { %176 = vadd.xlane.f32.xlu0 %v175_v30  ;;  %v141_v31 = vpop.xlane.xlu0 %140  ;;  %v144_v32 = vpop.xlane.xlu1 %143 }
 0x109   :  { %v155_v34 = vmul.f32 0.03125, %v141_v31  ;;  %v156_v35 = vmul.f32 0.03125, %v144_v32  ;;  %v168_v36 = vmul.f32 %v1508_v28, %v1508_v28  ;;  %v170_v37 = vmul.f32 %v1510_v29, %v1510_v29 }
 0x10b   :  { %v1518_v38 = vsub.f32 %v122_v6, %v155_v34  ;;  %v1520_v39 = vsub.f32 %v123_v7, %v156_v35  ;;  %v178_v40 = vsel %vm126_vm0, %v168_v36, 0.0  ;;  %v184_v43 = vsel %vm126_vm0, %v170_v37, 0.0 }
 0x10c   :  { %182 = vadd.xlane.f32.xlu0 %v181_v33  ;;  %179 = vadd.xlane.f32.xlu1 %v178_v40  ;;  %v147_v41 = vpop.xlane.xlu0 %146  ;;  %v150_v42 = vpop.xlane.xlu1 %149 }
 0x10d   :  { %v157_v44 = vmul.f32 0.03125, %v147_v41  ;;  %v158_v45 = vmul.f32 0.03125, %v150_v42  ;;  %v171_v46 = vmul.f32 %v1518_v38, %v1518_v38  ;;  %v172_v47 = vmul.f32 %v1520_v39, %v1520_v39 }
 0x10f   :  { %v1528_v48 = vsub.f32 %v124_v12, %v157_v44  ;;  %v1530_v49 = vsub.f32 %v125_v13, %v158_v45  ;;  %v187_v50 = vsel %vm126_vm0, %v171_v46, 0.0  ;;  %v190_v51 = vsel %vm126_vm0, %v172_v47, 0.0 }
 0x110   :  { %185 = vadd.xlane.f32.xlu1 %v184_v43  ;;  %188 = vadd.xlane.f32.xlu0 %v187_v50 }
 0x111   :  { %v173_v52 = vmul.f32 %v1528_v48, %v1528_v48  ;;  %v174_v53 = vmul.f32 %v1530_v49, %v1530_v49 }
 0x113   :  { %v193_v54 = vsel %vm126_vm0, %v173_v52, 0.0  ;;  %v196_v55 = vsel %vm126_vm0, %v174_v53, 0.0 }
 0x114   :  { %191 = vadd.xlane.f32.xlu1 %v190_v51  ;;  %194 = vadd.xlane.f32.xlu0 %v193_v54 }
 0x118   :  { %197 = vadd.xlane.f32.xlu1 %v196_v55 }
 0x195   :  { %v177_v58 = vpop.xlane.xlu0 %176 }
 0x196   :  { %v199_v59 = vmul.f32 0.03125, %v177_v58 }
 0x198   :  { %v207_v60 = vadd.f32 1e-05, %v199_v59 }
 0x199   :  { %v180_v61 = vpop.xlane.xlu1 %179  ;;  %v183_v62 = vpop.xlane.xlu0 %182 }
 0x19a   :  { %1102 = vrsqrt.f32 %v207_v60  ;;  %v200_v63 = vmul.f32 0.03125, %v180_v61  ;;  %v201_v0 = vmul.f32 0.03125, %v183_v62 }
 0x19c   :  { %v208_v1 = vadd.f32 1e-05, %v200_v63  ;;  %v209_v2 = vadd.f32 1e-05, %v201_v0 }
 0x19d   :  { %v186_v3 = vpop.xlane.xlu1 %185  ;;  %v189_v4 = vpop.xlane.xlu0 %188 }
 0x19e   :  { %1104 = vrsqrt.f32 %v208_v1  ;;  %v202_v5 = vmul.f32 0.03125, %v186_v3  ;;  %v203_v6 = vmul.f32 0.03125, %v189_v4 }
 0x19f   :  { %1106 = vrsqrt.f32 %v209_v2 }
 0x1a0   :  { %v210_v7 = vadd.f32 1e-05, %v202_v5  ;;  %v211_v8 = vadd.f32 1e-05, %v203_v6 }
 0x1a1   :  { %v192_v9 = vpop.xlane.xlu1 %191  ;;  %v195_v10 = vpop.xlane.xlu0 %194 }
 0x1a2   :  { %1108 = vrsqrt.f32 %v210_v7  ;;  %v204_v11 = vmul.f32 0.03125, %v192_v9  ;;  %v205_v12 = vmul.f32 0.03125, %v195_v10 }
 0x1a3   :  { %1110 = vrsqrt.f32 %v211_v8 }
 0x1a4   :  { %v1103_v13 = vpop.eup %1102  ;;  %v212_v14 = vadd.f32 1e-05, %v204_v11  ;;  %v213_v15 = vadd.f32 1e-05, %v205_v12 }
 0x1a5   :  { %v198_v16 = vpop.xlane.xlu1 %197  ;;  %v223_v17 = vmul.f32 %v1103_v13, %v1500_v20  ;;  %v950_v20 = vld [vmem:[%s1712_s2] ss:$0 sm:$0xff] }
 0x1a6   :  { %1112 = vrsqrt.f32 %v212_v14  ;;  %v206_v18 = vmul.f32 0.03125, %v198_v16 }
 0x1a7   :  { %1114 = vrsqrt.f32 %v213_v15  ;;  %v238_v26 = vmul.f32 %v949_v19, %v223_v17  ;;  %v1086_v17 = vld [vmem:[%s1717_s7] sm:$0xff]  }
 0x1a8   :  { %v1105_v22 = vpop.eup %1104  ;;  %v214_v23 = vadd.f32 1e-05, %v206_v18  ;;  %1024 = vmatprep.subr.bf16.mxu1 %v1086_v17  ;;  %v405_v18 = vlaneseq }
 0x1a9   :  { %v1107_v24 = vpop.eup %1106  ;;  %v224_v25 = vmul.f32 %v1105_v22, %v1508_v28  ;;  %v253_v34 = vadd.f32 %v950_v20, %v238_v26  ;;  %1025 = vmatpush3.bf16.msra.mxu1 %v1086_v17 }
 0x1aa   :  { %v225_v27 = vmul.f32 %v1107_v24, %v1502_v21  ;;  %1116 = vrsqrt.f32 %v214_v23 }
 0x1ab   :  { %v239_v30 = vmul.f32 %v949_v19, %v224_v25  ;;  %v1322_v25 = vmov 0.0  }
 0x1ac   :  { %v1109_v31 = vpop.eup %1108  ;;  %v240_v36 = vmul.f32 %v949_v19, %v225_v27 }
 0x1ad   :  { %v1111_v32 = vpop.eup %1110  ;;  %v226_v33 = vmul.f32 %v1109_v31, %v1510_v29  ;;  %v254_v35 = vadd.f32 %v950_v20, %v239_v30 }
 0x1ae   :  { %v227_v37 = vmul.f32 %v1111_v32, %v1518_v38  ;;  %v255_v43 = vadd.f32 %v950_v20, %v240_v36 }
 0x1af   :  { %v261_v40 = vpack.c.bf16 %v254_v35, %v253_v34  ;;  %v241_v28 = vmul.f32 %v949_v19, %v226_v33 }
 0x1b0   :  { %v1113_v41 = vpop.eup %1112  ;;  %v242_v45 = vmul.f32 %v949_v19, %v227_v37 }
 0x1b1   :  { %v1115_v42 = vpop.eup %1114  ;;  %v228_v21 = vmul.f32 %v1113_v41, %v1520_v39  ;;  %1016 = vmatprep.mubr.msk.bf16.mxu0 %vm126_vm0, %v261_v40  ;;  %v256_v44 = vadd.f32 %v950_v20, %v241_v28 }
 0x1b2   :  { %v229_v46 = vmul.f32 %v1115_v42, %v1528_v48  ;;  %v257_v38 = vadd.f32 %v950_v20, %v242_v45  ;;  %v951_v48 = vld [vmem:[#allocation5] ss:$0 sm:$0xff] }
 0x1b3   :  { %v262_v47 = vpack.c.bf16 %v256_v44, %v255_v43  ;;  %v243_v29 = vmul.f32 %v949_v19, %v228_v21 }
 0x1b4   :  { %v1117_v50 = vpop.eup %1116  ;;  %v244_v53 = vmul.f32 %v949_v19, %v229_v46 }
 0x1b5   :  { %v230_v51 = vmul.f32 %v1117_v50, %v1530_v49  ;;  %1017 = vmatmul.mubr.msk.bf16.vlgmr.msra.gmra.mrb[0].mxu0 %vm126_vm0, %v262_v47  ;;  %v258_v52 = vadd.f32 %v950_v20, %v243_v29 }
 0x1b6   :  { %v259_v39 = vadd.f32 %v950_v20, %v244_v53 }
 0x1b7   :  { %v263_v54 = vpack.c.bf16 %v258_v52, %v257_v38  ;;  %v245_v55 = vmul.f32 %v949_v19, %v230_v51  ;;  %v1561_v19 = vand.u32 127, %v405_v18 }
 0x1b9   :  { %1020 = vmatprep.mubr.msk.bf16.mxu0 %vm126_vm0, %v263_v54  ;;  %v260_v56 = vadd.f32 %v950_v20, %v245_v55  ;;  %vm407_vm1 = vcmp.lt.s32.totalorder %v1561_v19, 64  ;;  %vm684_vm2 = vcmp.lt.s32.totalorder %v1561_v19, 32 }
 0x1ba   :  { %v958_v26 = vsel %vm407_vm1, 1.0, %v1322_v25 }
 0x1bb   :  { %v264_v57 = vpack.c.bf16 %v260_v56, %v259_v39 }
 0x1bd   :  { %1021 = vmatmul.mubr.msk.bf16.gmra.mrb[4].mxu0 %vm126_vm0, %v264_v57 }
 0x288   :  { %v1018_v58 = vpop.f32.mrb[0].mxu0 }
 0x289   :  { %v334_v59 = vpop.f32.mrb[1].mxu0  ;;  %v343_v62 = vadd.f32 %v1018_v58, %v951_v48 }
 0x28a   :  { %v335_v60 = vadd.f32 %v951_v48, %v334_v59  ;;  %v1019_v61 = vpop.f32.mrb[2].mxu0 }
 0x28b   :  { %v337_v49 = vpop.f32.mrb[3].mxu0  ;;  %v346_v1 = vadd.f32 %v1019_v61, %v951_v48  ;;  %v367_v3 = vmax.f32 %v343_v62, 0.0  ;;  %v1087_v62 = vld [vmem:[%s1717_s7 + $0x8] sm:$0xff]  }
 0x28c   :  { %v365_v63 = vmax.f32 %v335_v60, 0.0  ;;  %v338_v0 = vadd.f32 %v951_v48, %v337_v49  ;;  %1026 = vmatprep.subr.bf16.mxu1 %v1087_v62 }
 0x28d   :  { %v368_v6 = vmax.f32 %v346_v1, 0.0  ;;  %1027 = vmatpush3.bf16.msra.mxu1 %v1087_v62  ;;  %v1090_v1 = vld [vmem:[%s1717_s7 + $0x20] sm:$0xff]  }
 0x28e   :  { %v366_v2 = vmax.f32 %v338_v0, 0.0  ;;  %373 = vadd.xlane.f32.xlu0 %v365_v63  ;;  %v1089_v0 = vld [vmem:[%s1717_s7 + $0x18] sm:$0xff]  }
 0x290   :  { %375 = vadd.xlane.f32.xlu1 %v366_v2  ;;  %v1022_v4 = vpop.f32.mrb[4].mxu0 }
 0x291   :  { %v350_v5 = vpop.f32.mrb[5].mxu0  ;;  %v359_v10 = vadd.f32 %v1022_v4, %v951_v48  ;;  %v1093_v4 = vld [vmem:[%s1717_s7 + $0x38] sm:$0xff]  }
 0x292   :  { %v351_v7 = vadd.f32 %v951_v48, %v350_v5  ;;  %377 = vadd.xlane.f32.xlu0 %v367_v3  ;;  %v1023_v8 = vpop.f32.mrb[6].mxu0 }
 0x293   :  { %v353_v9 = vpop.f32.mrb[7].mxu0  ;;  %v362_v13 = vadd.f32 %v1023_v8, %v951_v48  ;;  %v371_v15 = vmax.f32 %v359_v10, 0.0 }
 0x294   :  { %v369_v11 = vmax.f32 %v351_v7, 0.0  ;;  %v354_v12 = vadd.f32 %v951_v48, %v353_v9  ;;  %379 = vadd.xlane.f32.xlu1 %v368_v6 }
 0x295   :  { %v372_v16 = vmax.f32 %v362_v13, 0.0 }
 0x296   :  { %v370_v14 = vmax.f32 %v354_v12, 0.0  ;;  %381 = vadd.xlane.f32.xlu0 %v369_v11 }
 0x298   :  { %383 = vadd.xlane.f32.xlu1 %v370_v14 }
 0x29a   :  { %385 = vadd.xlane.f32.xlu0 %v371_v15 }
 0x29c   :  { %387 = vadd.xlane.f32.xlu1 %v372_v16 }
 0x31b   :  { %v374_v22 = vpop.xlane.xlu0 %373 }
 0x31c   :  { %v389_v23 = vmul.f32 0.015625, %v374_v22 }
 0x31d   :  { %v376_v24 = vpop.xlane.xlu1 %375 }
 0x31e   :  { %v397_v27 = vsub.f32 %v365_v63, %v389_v23  ;;  %v390_v20 = vmul.f32 0.015625, %v376_v24  ;;  %v1088_v63 = vld [vmem:[%s1717_s7 + $0x10] sm:$0xff]  }
 0x31f   :  { %v378_v30 = vpop.xlane.xlu0 %377  ;;  %1028 = vmatprep.subr.bf16.mxu1 %v1088_v63 }
 0x320   :  { %v398_v31 = vsub.f32 %v366_v2, %v390_v20  ;;  %v391_v32 = vmul.f32 0.015625, %v378_v30  ;;  %v1565_v33 = vmul.f32 %v958_v26, %v397_v27  ;;  %1029 = vmatpush3.bf16.msra.mxu1 %v1088_v63  ;;  %v1091_v2 = vld [vmem:[%s1717_s7 + $0x28] sm:$0xff]  }
 0x321   :  { %v380_v34 = vpop.xlane.xlu1 %379  ;;  %1030 = vmatprep.subr.bf16.mxu1 %v1089_v0 }
 0x322   :  { %v399_v35 = vsub.f32 %v367_v3, %v391_v32  ;;  %v392_v36 = vmul.f32 0.015625, %v380_v34  ;;  %v418_v37 = vmul.f32 %v1565_v33, %v1565_v33  ;;  %v1569_v40 = vmul.f32 %v958_v26, %v398_v31  ;;  %v1092_v3 = vld [vmem:[%s1717_s7 + $0x30] sm:$0xff]  }
 0x323   :  { %v382_v28 = vpop.xlane.xlu0 %381 }
 0x324   :  { %v400_v41 = vsub.f32 %v368_v6, %v392_v36  ;;  %v393_v42 = vmul.f32 0.015625, %v382_v28  ;;  %426 = vadd.xlane.f32.xlu0 %v418_v37  ;;  %v419_v21 = vmul.f32 %v1569_v40, %v1569_v40  ;;  %v1573_v43 = vmul.f32 %v958_v26, %v399_v35  ;;  %1031 = vmatpush3.bf16.msra.mxu1 %v1089_v0  ;;  %v959_v35 = vld [vmem:[#allocation7] ss:$0 sm:$0xff] }
 0x325   :  { %v384_v44 = vpop.xlane.xlu1 %383  ;;  %1032 = vmatprep.subr.bf16.mxu1 %v1090_v1 }
 0x326   :  { %v401_v45 = vsub.f32 %v369_v11, %v393_v42  ;;  %v394_v46 = vmul.f32 0.015625, %v384_v44  ;;  %428 = vadd.xlane.f32.xlu1 %v419_v21  ;;  %v420_v47 = vmul.f32 %v1573_v43, %v1573_v43  ;;  %v1577_v29 = vmul.f32 %v958_v26, %v400_v41  ;;  %v960_v44 = vld [vmem:[#allocation8] ss:$0 sm:$0xff] }
 0x327   :  { %v386_v50 = vpop.xlane.xlu0 %385 }
 0x328   :  { %v402_v51 = vsub.f32 %v370_v14, %v394_v46  ;;  %v395_v38 = vmul.f32 0.015625, %v386_v50  ;;  %430 = vadd.xlane.f32.xlu0 %v420_v47  ;;  %v421_v52 = vmul.f32 %v1577_v29, %v1577_v29  ;;  %v1581_v53 = vmul.f32 %v958_v26, %v401_v45  ;;  %1033 = vmatpush3.bf16.msra.mxu1 %v1090_v1 }
 0x329   :  { %v388_v54 = vpop.xlane.xlu1 %387  ;;  %1034 = vmatprep.subr.bf16.mxu1 %v1091_v2 }
 0x32a   :  { %v403_v55 = vsub.f32 %v371_v15, %v395_v38  ;;  %v396_v39 = vmul.f32 0.015625, %v388_v54  ;;  %432 = vadd.xlane.f32.xlu1 %v421_v52  ;;  %v422_v56 = vmul.f32 %v1581_v53, %v1581_v53  ;;  %v1585_v57 = vmul.f32 %v958_v26, %v402_v51 }
 0x32c   :  { %v404_v48 = vsub.f32 %v372_v16, %v396_v39  ;;  %434 = vadd.xlane.f32.xlu0 %v422_v56  ;;  %v423_v58 = vmul.f32 %v1585_v57, %v1585_v57  ;;  %v1589_v59 = vmul.f32 %v958_v26, %v403_v55  ;;  %1035 = vmatpush3.bf16.msra.mxu1 %v1091_v2 }
 0x32d   :  { %1036 = vmatprep.subr.bf16.mxu1 %v1092_v3 }
 0x32e   :  { %436 = vadd.xlane.f32.xlu1 %v423_v58  ;;  %v424_v60 = vmul.f32 %v1589_v59, %v1589_v59  ;;  %v1593_v61 = vmul.f32 %v958_v26, %v404_v48 }
 0x330   :  { %438 = vadd.xlane.f32.xlu0 %v424_v60  ;;  %v425_v49 = vmul.f32 %v1593_v61, %v1593_v61  ;;  %1037 = vmatpush3.bf16.msra.mxu1 %v1092_v3 }
 0x331   :  { %1038 = vmatprep.subr.bf16.mxu1 %v1093_v4 }
 0x332   :  { %440 = vadd.xlane.f32.xlu1 %v425_v49 }
 0x334   :  { %1039 = vmatpush3.bf16.msra.mxu1 %v1093_v4 }
 0x3b1   :  { %v427_v5 = vpop.xlane.xlu0 %426 }
 0x3b2   :  { %v442_v6 = vmul.f32 0.015625, %v427_v5 }
 0x3b3   :  { %v429_v7 = vpop.xlane.xlu1 %428 }
 0x3b4   :  { %v450_v8 = vadd.f32 1e-05, %v442_v6  ;;  %v443_v9 = vmul.f32 0.015625, %v429_v7 }
 0x3b5   :  { %v431_v10 = vpop.xlane.xlu0 %430 }
 0x3b6   :  { %1118 = vrsqrt.f32 %v450_v8  ;;  %v451_v11 = vadd.f32 1e-05, %v443_v9  ;;  %v444_v12 = vmul.f32 0.015625, %v431_v10 }
 0x3b7   :  { %v433_v13 = vpop.xlane.xlu1 %432 }
 0x3b8   :  { %1120 = vrsqrt.f32 %v451_v11  ;;  %v452_v14 = vadd.f32 1e-05, %v444_v12  ;;  %v445_v15 = vmul.f32 0.015625, %v433_v13 }
 0x3b9   :  { %v435_v16 = vpop.xlane.xlu0 %434 }
 0x3ba   :  { %1122 = vrsqrt.f32 %v452_v14  ;;  %v453_v17 = vadd.f32 1e-05, %v445_v15  ;;  %v446_v18 = vmul.f32 0.015625, %v435_v16 }
 0x3bb   :  { %v437_v22 = vpop.xlane.xlu1 %436 }
 0x3bc   :  { %1124 = vrsqrt.f32 %v453_v17  ;;  %v454_v23 = vadd.f32 1e-05, %v446_v18  ;;  %v447_v24 = vmul.f32 0.015625, %v437_v22 }
 0x3bd   :  { %v439_v26 = vpop.xlane.xlu0 %438 }
 0x3be   :  { %1126 = vrsqrt.f32 %v454_v23  ;;  %v455_v27 = vadd.f32 1e-05, %v447_v24  ;;  %v448_v20 = vmul.f32 0.015625, %v439_v26 }
 0x3bf   :  { %v441_v30 = vpop.xlane.xlu1 %440 }
 0x3c0   :  { %v1119_v31 = vpop.eup %1118  ;;  %1128 = vrsqrt.f32 %v455_v27  ;;  %v456_v32 = vadd.f32 1e-05, %v448_v20  ;;  %v449_v34 = vmul.f32 0.015625, %v441_v30 }
 0x3c1   :  { %v466_v36 = vmul.f32 %v1119_v31, %v1565_v33 }
 0x3c2   :  { %v1121_v37 = vpop.eup %1120  ;;  %1130 = vrsqrt.f32 %v456_v32  ;;  %v457_v28 = vadd.f32 1e-05, %v449_v34 }
 0x3c3   :  { %v467_v41 = vmul.f32 %v1121_v37, %v1569_v40  ;;  %v481_v42 = vmul.f32 %v959_v35, %v466_v36  ;;  %v1094_v36 = vld [vmem:[%s1721_s11] sm:$0xff]  }
 0x3c4   :  { %v1123_v21 = vpop.eup %1122  ;;  %1132 = vrsqrt.f32 %v457_v28  ;;  %1048 = vmatprep.subr.bf16.mxu0 %v1094_v36 }
 0x3c5   :  { %v482_v45 = vmul.f32 %v959_v35, %v467_v41  ;;  %v468_v46 = vmul.f32 %v1123_v21, %v1573_v43  ;;  %v496_v50 = vadd.f32 %v960_v44, %v481_v42  ;;  %1049 = vmatpush3.bf16.msra.mxu0 %v1094_v36  ;;  %v970_v42 = vsel %vm684_vm2, 1.0, %v1322_v25 }
 0x3c6   :  { %v1125_v47 = vpop.eup %1124 }
 0x3c7   :  { %v497_v51 = vadd.f32 %v960_v44, %v482_v45  ;;  %v469_v38 = vmul.f32 %v1125_v47, %v1577_v29  ;;  %v483_v52 = vmul.f32 %v959_v35, %v468_v46 }
 0x3c8   :  { %v1127_v54 = vpop.eup %1126 }
 0x3c9   :  { %v504_v33 = vpack.c.bf16 %v497_v51, %v496_v50  ;;  %v484_v55 = vmul.f32 %v959_v35, %v469_v38  ;;  %v470_v39 = vmul.f32 %v1127_v54, %v1581_v53  ;;  %v498_v40 = vadd.f32 %v960_v44, %v483_v52 }
 0x3ca   :  { %v1129_v56 = vpop.eup %1128 }
 0x3cb   :  { %1040 = vmatprep.mubr.bf16.mxu1 %v504_v33  ;;  %v499_v48 = vadd.f32 %v960_v44, %v484_v55  ;;  %v471_v58 = vmul.f32 %v1129_v56, %v1585_v57  ;;  %v485_v60 = vmul.f32 %v959_v35, %v470_v39  ;;  %v961_v57 = vld [vmem:[#allocation10] ss:$0 sm:$0xff] }
 0x3cc   :  { %v1131_v49 = vpop.eup %1130 }
 0x3cd   :  { %v505_v43 = vpack.c.bf16 %v499_v48, %v498_v40  ;;  %v486_v62 = vmul.f32 %v959_v35, %v471_v58  ;;  %v472_v63 = vmul.f32 %v1131_v49, %v1589_v59  ;;  %v500_v29 = vadd.f32 %v960_v44, %v485_v60 }
 0x3ce   :  { %v1133_v0 = vpop.eup %1132 }
 0x3cf   :  { %1041 = vmatmul.mubr.bf16.vlgmr.msra.gmra.mrb[0].mxu1 %v505_v43  ;;  %v501_v1 = vadd.f32 %v960_v44, %v486_v62  ;;  %v473_v2 = vmul.f32 %v1133_v0, %v1593_v61  ;;  %v487_v3 = vmul.f32 %v959_v35, %v472_v63 }
 0x3d1   :  { %v506_v53 = vpack.c.bf16 %v501_v1, %v500_v29  ;;  %v488_v4 = vmul.f32 %v959_v35, %v473_v2  ;;  %v502_v5 = vadd.f32 %v960_v44, %v487_v3 }
 0x3d3   :  { %1044 = vmatprep.mubr.bf16.mxu1 %v506_v53  ;;  %v503_v6 = vadd.f32 %v960_v44, %v488_v4 }
 0x3d5   :  { %v507_v7 = vpack.c.bf16 %v503_v6, %v502_v5 }
 0x3d7   :  { %1045 = vmatmul.mubr.bf16.gmra.mrb[4].mxu1 %v507_v7 }
 0x4a2   :  { %v1042_v8 = vpop.f32.mrb[0].mxu1 }
 0x4a3   :  { %v613_v9 = vpop.f32.mrb[1].mxu1  ;;  %v622_v12 = vadd.f32 %v1042_v8, %v961_v57 }
 0x4a4   :  { %v614_v10 = vadd.f32 %v961_v57, %v613_v9  ;;  %v1043_v11 = vpop.f32.mrb[2].mxu1 }
 0x4a5   :  { %v616_v59 = vpop.f32.mrb[3].mxu1  ;;  %v625_v15 = vadd.f32 %v1043_v11, %v961_v57  ;;  %v646_v61 = vmax.f32 %v622_v12, 0.0  ;;  %v1096_v11 = vld [vmem:[%s1721_s11 + $0x10] sm:$0xff]   ;;  %v1098_v12 = vld [vmem:[%s1721_s11 + $0x20] sm:$0xff]  }
 0x4a6   :  { %v644_v13 = vmax.f32 %v614_v10, 0.0  ;;  %v617_v14 = vadd.f32 %v961_v57, %v616_v59  ;;  %v1095_v10 = vld [vmem:[%s1721_s11 + $0x8] sm:$0xff]   ;;  %v1097_v59 = vld [vmem:[%s1721_s11 + $0x18] sm:$0xff]  }
 0x4a7   :  { %v647_v22 = vmax.f32 %v625_v15, 0.0  ;;  %1050 = vmatprep.subr.bf16.mxu0 %v1095_v10  ;;  %v1101_v15 = vld [vmem:[%s1721_s11 + $0x38] sm:$0xff]  }
 0x4a8   :  { %v645_v16 = vmax.f32 %v617_v14, 0.0  ;;  %652 = vadd.xlane.f32.xlu0 %v644_v13  ;;  %1051 = vmatpush3.bf16.msra.mxu0 %v1095_v10  ;;  %v1100_v14 = vld [vmem:[%s1721_s11 + $0x30] sm:$0xff]  }
 0x4a9   :  { %1052 = vmatprep.subr.bf16.mxu0 %v1096_v11 }
 0x4aa   :  { %654 = vadd.xlane.f32.xlu1 %v645_v16  ;;  %v1046_v17 = vpop.f32.mrb[4].mxu1 }
 0x4ab   :  { %v629_v18 = vpop.f32.mrb[5].mxu1  ;;  %v638_v27 = vadd.f32 %v1046_v17, %v961_v57 }
 0x4ac   :  { %v630_v23 = vadd.f32 %v961_v57, %v629_v18  ;;  %656 = vadd.xlane.f32.xlu0 %v646_v61  ;;  %v1047_v24 = vpop.f32.mrb[6].mxu1  ;;  %1053 = vmatpush3.bf16.msra.mxu0 %v1096_v11 }
 0x4ad   :  { %v632_v26 = vpop.f32.mrb[7].mxu1  ;;  %v641_v31 = vadd.f32 %v1047_v24, %v961_v57  ;;  %v650_v34 = vmax.f32 %v638_v27, 0.0  ;;  %1054 = vmatprep.subr.bf16.mxu0 %v1097_v59 }
 0x4ae   :  { %v648_v20 = vmax.f32 %v630_v23, 0.0  ;;  %v633_v30 = vadd.f32 %v961_v57, %v632_v26  ;;  %658 = vadd.xlane.f32.xlu1 %v647_v22 }
 0x4af   :  { %v651_v35 = vmax.f32 %v641_v31, 0.0 }
 0x4b0   :  { %v649_v32 = vmax.f32 %v633_v30, 0.0  ;;  %660 = vadd.xlane.f32.xlu0 %v648_v20  ;;  %1055 = vmatpush3.bf16.msra.mxu0 %v1097_v59 }
 0x4b1   :  { %1056 = vmatprep.subr.bf16.mxu0 %v1098_v12 }
 0x4b2   :  { %662 = vadd.xlane.f32.xlu1 %v649_v32 }
 0x4b4   :  { %664 = vadd.xlane.f32.xlu0 %v650_v34  ;;  %1057 = vmatpush3.bf16.msra.mxu0 %v1098_v12 }
 0x4b6   :  { %666 = vadd.xlane.f32.xlu1 %v651_v35 }
 0x535   :  { %v653_v37 = vpop.xlane.xlu0 %652 }
 0x536   :  { %v668_v28 = vmul.f32 0.03125, %v653_v37 }
 0x537   :  { %v655_v41 = vpop.xlane.xlu1 %654 }
 0x538   :  { %v676_v21 = vsub.f32 %v644_v13, %v668_v28  ;;  %v669_v44 = vmul.f32 0.03125, %v655_v41  ;;  %v1099_v13 = vld [vmem:[%s1721_s11 + $0x28] sm:$0xff]  }
 0x539   :  { %v657_v45 = vpop.xlane.xlu0 %656  ;;  %1058 = vmatprep.subr.bf16.mxu0 %v1099_v13 }
 0x53a   :  { %v677_v46 = vsub.f32 %v645_v16, %v669_v44  ;;  %v670_v47 = vmul.f32 0.03125, %v657_v45  ;;  %v1631_v50 = vmul.f32 %v970_v42, %v676_v21  ;;  %1059 = vmatpush3.bf16.msra.mxu0 %v1099_v13  ;;  %v971_v45 = vld [vmem:[#allocation11] ss:$0 sm:$0xff] }
 0x53b   :  { %v659_v51 = vpop.xlane.xlu1 %658  ;;  %1060 = vmatprep.subr.bf16.mxu0 %v1100_v14 }
 0x53c   :  { %v678_v38 = vsub.f32 %v646_v61, %v670_v47  ;;  %v671_v52 = vmul.f32 0.03125, %v659_v51  ;;  %v695_v54 = vmul.f32 %v1631_v50, %v1631_v50  ;;  %v1635_v33 = vmul.f32 %v970_v42, %v677_v46 }
 0x53d   :  { %v661_v19 = vpop.xlane.xlu0 %660 }
 0x53e   :  { %v679_v55 = vsub.f32 %v647_v22, %v671_v52  ;;  %v672_v39 = vmul.f32 0.03125, %v661_v19  ;;  %703 = vadd.xlane.f32.xlu0 %v695_v54  ;;  %v696_v25 = vmul.f32 %v1635_v33, %v1635_v33  ;;  %v1639_v56 = vmul.f32 %v970_v42, %v678_v38  ;;  %1061 = vmatpush3.bf16.msra.mxu0 %v1100_v14 }
 0x53f   :  { %v663_v40 = vpop.xlane.xlu1 %662  ;;  %1062 = vmatprep.subr.bf16.mxu0 %v1101_v15 }
 0x540   :  { %v680_v48 = vsub.f32 %v648_v20, %v672_v39  ;;  %v673_v58 = vmul.f32 0.03125, %v663_v40  ;;  %705 = vadd.xlane.f32.xlu1 %v696_v25  ;;  %v697_v60 = vmul.f32 %v1639_v56, %v1639_v56  ;;  %v1643_v49 = vmul.f32 %v970_v42, %v679_v55  ;;  %v972_v39 = vld [vmem:[%s1720_s10] ss:$0 sm:$0xff] }
 0x541   :  { %v665_v43 = vpop.xlane.xlu0 %664 }
 0x542   :  { %v681_v62 = vsub.f32 %v649_v32, %v673_v58  ;;  %v674_v63 = vmul.f32 0.03125, %v665_v43  ;;  %707 = vadd.xlane.f32.xlu0 %v697_v60  ;;  %v698_v0 = vmul.f32 %v1643_v49, %v1643_v49  ;;  %v1647_v29 = vmul.f32 %v970_v42, %v680_v48  ;;  %1063 = vmatpush3.bf16.msra.mxu0 %v1101_v15 }
 0x543   :  { %v667_v1 = vpop.xlane.xlu1 %666 }
 0x544   :  { %v682_v2 = vsub.f32 %v650_v34, %v674_v63  ;;  %v675_v3 = vmul.f32 0.03125, %v667_v1  ;;  %709 = vadd.xlane.f32.xlu1 %v698_v0  ;;  %v699_v53 = vmul.f32 %v1647_v29, %v1647_v29  ;;  %v1651_v4 = vmul.f32 %v970_v42, %v681_v62 }
 0x546   :  { %v683_v5 = vsub.f32 %v651_v35, %v675_v3  ;;  %711 = vadd.xlane.f32.xlu0 %v699_v53  ;;  %v700_v6 = vmul.f32 %v1651_v4, %v1651_v4  ;;  %v1655_v7 = vmul.f32 %v970_v42, %v682_v2 }
 0x548   :  { %713 = vadd.xlane.f32.xlu1 %v700_v6  ;;  %v701_v57 = vmul.f32 %v1655_v7, %v1655_v7  ;;  %v1659_v8 = vmul.f32 %v970_v42, %v683_v5 }
 0x54a   :  { %715 = vadd.xlane.f32.xlu0 %v701_v57  ;;  %v702_v9 = vmul.f32 %v1659_v8, %v1659_v8 }
 0x54c   :  { %717 = vadd.xlane.f32.xlu1 %v702_v9 }
 0x5cb   :  { %v704_v16 = vpop.xlane.xlu0 %703 }
 0x5cc   :  { %v719_v61 = vmul.f32 0.03125, %v704_v16 }
 0x5cd   :  { %v706_v17 = vpop.xlane.xlu1 %705 }
 0x5ce   :  { %v727_v18 = vadd.f32 1e-05, %v719_v61  ;;  %v720_v22 = vmul.f32 0.03125, %v706_v17 }
 0x5cf   :  { %v708_v23 = vpop.xlane.xlu0 %707 }
 0x5d0   :  { %1134 = vrsqrt.f32 %v727_v18  ;;  %v728_v24 = vadd.f32 1e-05, %v720_v22  ;;  %v721_v26 = vmul.f32 0.03125, %v708_v23 }
 0x5d1   :  { %v710_v27 = vpop.xlane.xlu1 %709 }
 0x5d2   :  { %1136 = vrsqrt.f32 %v728_v24  ;;  %v729_v20 = vadd.f32 1e-05, %v721_v26  ;;  %v722_v30 = vmul.f32 0.03125, %v710_v27 }
 0x5d3   :  { %v712_v31 = vpop.xlane.xlu0 %711 }
 0x5d4   :  { %1138 = vrsqrt.f32 %v729_v20  ;;  %v730_v32 = vadd.f32 1e-05, %v722_v30  ;;  %v723_v34 = vmul.f32 0.03125, %v712_v31 }
 0x5d5   :  { %v714_v35 = vpop.xlane.xlu1 %713 }
 0x5d6   :  { %1140 = vrsqrt.f32 %v730_v32  ;;  %v731_v36 = vadd.f32 1e-05, %v723_v34  ;;  %v724_v37 = vmul.f32 0.03125, %v714_v35 }
 0x5d7   :  { %v716_v28 = vpop.xlane.xlu0 %715 }
 0x5d8   :  { %1142 = vrsqrt.f32 %v731_v36  ;;  %v732_v41 = vadd.f32 1e-05, %v724_v37  ;;  %v725_v42 = vmul.f32 0.03125, %v716_v28 }
 0x5d9   :  { %v718_v21 = vpop.xlane.xlu1 %717 }
 0x5da   :  { %v1135_v44 = vpop.eup %1134  ;;  %1144 = vrsqrt.f32 %v732_v41  ;;  %v733_v46 = vadd.f32 1e-05, %v725_v42  ;;  %v726_v47 = vmul.f32 0.03125, %v718_v21 }
 0x5db   :  { %v743_v51 = vmul.f32 %v1135_v44, %v1631_v50 }
 0x5dc   :  { %v1137_v38 = vpop.eup %1136  ;;  %1146 = vrsqrt.f32 %v733_v46  ;;  %v734_v52 = vadd.f32 1e-05, %v726_v47 }
 0x5dd   :  { %v744_v54 = vmul.f32 %v1137_v38, %v1635_v33  ;;  %v758_v19 = vmul.f32 %v971_v45, %v743_v51 }
 0x5de   :  { %v1139_v55 = vpop.eup %1138  ;;  %1148 = vrsqrt.f32 %v734_v52 }
 0x5df   :  { %v745_v25 = vmul.f32 %v1139_v55, %v1639_v56  ;;  %v759_v40 = vmul.f32 %v971_v45, %v744_v54  ;;  %v773_v50 = vadd.f32 %v972_v39, %v758_v19 }
 0x5e0   :  { %v1141_v48 = vpop.eup %1140 }
 0x5e1   :  { %v760_v58 = vmul.f32 %v971_v45, %v745_v25  ;;  %v746_v60 = vmul.f32 %v1141_v48, %v1643_v49  ;;  %v774_v43 = vadd.f32 %v972_v39, %v759_v40 }
 0x5e2   :  { %v1143_v62 = vpop.eup %1142 }
 0x5e3   :  { %v761_v63 = vmul.f32 %v971_v45, %v746_v60  ;;  %v781_v0 = vpack.c.bf16 %v774_v43, %v773_v50  ;;  %v747_v33 = vmul.f32 %v1143_v62, %v1647_v29  ;;  %v775_v2 = vadd.f32 %v972_v39, %v760_v58 }
 0x5e4   :  { %v1145_v1 = vpop.eup %1144 }
 0x5e5   :  { %1064 = vmatprep.mubr.bf16.mxu0 %v781_v0  ;;  %v776_v3 = vadd.f32 %v972_v39, %v761_v63  ;;  %v748_v53 = vmul.f32 %v1145_v1, %v1651_v4  ;;  %v762_v5 = vmul.f32 %v971_v45, %v747_v33  ;;  %v973_v4 = vld [vmem:[%s1722_s12] ss:$0 sm:$0xff]  ;;  %s1282_s12 = scalar_lea.vmem %s935_s30, 1024 }
 0x5e6   :  { %v1147_v56 = vpop.eup %1146  ;;  %p1283_p6 = scmp.ne.s32.totalorder %s935_s30, %s1282_s12  ;;  %p1288_p8 = scmp.lt.s32.totalorder %s1282_s12, %s1282_s12 }
 0x5e7   :  { %v782_v6 = vpack.c.bf16 %v776_v3, %v775_v2  ;;  %v763_v57 = vmul.f32 %v971_v45, %v748_v53  ;;  %v749_v9 = vmul.f32 %v1147_v56, %v1655_v7  ;;  %v777_v10 = vadd.f32 %v972_v39, %v762_v5 }
 0x5e8   :  { %v1149_v49 = vpop.eup %1148  ;;  %p1289_p9 = por %p1288_p8, %p1287_p7 }
 0x5e9   :  { %1065 = vmatmul.mubr.bf16.vlgmr.msra.gmra.mrb[8].mxu0 %v782_v6  ;;  %v778_v11 = vadd.f32 %v972_v39, %v763_v57  ;;  %v750_v59 = vmul.f32 %v1149_v49, %v1659_v8  ;;  %v764_v12 = vmul.f32 %v971_v45, %v749_v9 }
 0x5ea   :  { %p1290_p10 = pnand %p1289_p9, %p1283_p6 }
 0x5eb   :  { %v783_v29 = vpack.c.bf16 %v778_v11, %v777_v10  ;;  %v765_v13 = vmul.f32 %v971_v45, %v750_v59  ;;  %v779_v14 = vadd.f32 %v972_v39, %v764_v12 }
 0x5ed   :  { %1068 = vmatprep.mubr.bf16.mxu0 %v783_v29  ;;  %v780_v15 = vadd.f32 %v972_v39, %v765_v13 }
 0x5ef   :  { %v784_v16 = vpack.c.bf16 %v780_v15, %v779_v14 }
 0x5f1   :  { %1069 = vmatmul.mubr.bf16.gmra.mrb[12].mxu0 %v784_v16 }
 0x6bc   :  { %v1066_v61 = vpop.f32.mrb[8].mxu0 }
 0x6bd   :  { %v899_v7 = vadd.f32 %v1066_v61, %v973_v4  ;;  %v890_v17 = vpop.f32.mrb[9].mxu0 }
 0x6be   :  { %v891_v18 = vadd.f32 %v973_v4, %v890_v17  ;;  %v1067_v22 = vpop.f32.mrb[10].mxu0 }
 0x6bf   :  { %923 = vst [vmem:[#allocation13 + $0x10] sm:$0xff] %v899_v7  ;;  %v902_v23 = vadd.f32 %v1067_v22, %v973_v4  ;;  %v893_v8 = vpop.f32.mrb[11].mxu0 }
 0x6c0   :  { %921 = vst [vmem:[#allocation13] sm:$0xff] %v891_v18  ;;  %v894_v24 = vadd.f32 %v973_v4, %v893_v8 }
 0x6c1   :  { %924 = vst [vmem:[#allocation13 + $0x18] sm:$0xff] %v902_v23 }
 0x6c2   :  { %922 = vst [vmem:[#allocation13 + $0x8] sm:$0xff] %v894_v24 }
 0x6c4   :  { %v1070_v26 = vpop.f32.mrb[12].mxu0 }
 0x6c5   :  { %v915_v27 = vadd.f32 %v1070_v26, %v973_v4  ;;  %v906_v20 = vpop.f32.mrb[13].mxu0 }
 0x6c6   :  { %v907_v30 = vadd.f32 %v973_v4, %v906_v20  ;;  %v1071_v31 = vpop.f32.mrb[14].mxu0 }
 0x6c7   :  { %927 = vst [vmem:[#allocation13 + $0x30] sm:$0xff] %v915_v27  ;;  %v918_v32 = vadd.f32 %v1071_v31, %v973_v4  ;;  %v909_v34 = vpop.f32.mrb[15].mxu0 }
 0x6c8   :  { %925 = vst [vmem:[#allocation13 + $0x20] sm:$0xff] %v907_v30  ;;  %v910_v35 = vadd.f32 %v973_v4, %v909_v34 }
 0x6c9   :  { %928 = vst [vmem:[#allocation13 + $0x38] sm:$0xff] %v918_v32 }
 0x6ca   :  { %926 = vst [vmem:[#allocation13 + $0x28] sm:$0xff] %v910_v35 }
 0x6cb   :  { %1293 = shalt.err (!%p1290_p10)
}
 0x6cc   :  { %s1294_s26 = scalar_lea.hbm %s1723_s13, 1024 }
 0x6cd   :  { %p1295_p11 = scmp.ne.s32.totalorder %s1723_s13, %s1294_s26  ;;  %p1298_p12 = scmp.lt.u32.totalorder %s1294_s26, %s1723_s13 }
 0x6cf   :  { %p1300_p13 = pnand %p1298_p12, %p1295_p11 }
 0x6d1   :  { %1303 = shalt.err (!%p1300_p13)
}
 0x6d2   :  { %s1324_s7 = smov 128   ;;  %s1325_s19 = smov 8  }
 0x6d3   :  { %940 = dma.vmem_to_hbm [thread:$0]  %s935_s30, 1024, %s1723_s13, [#allocation4], %s1324_s7, %s1324_s7, %s1325_s19  }
 0x6d4   :  { %1312 = dma.done.wait [#allocation4], 1024  }
 0x6d5   :  { %1313 = vsyncadd [#allocation4], 4294966272 }
 0x6d6   :  { %944 = vsyncpa [#allocation3], 1 }
 0x6d7   :  { %945 = vsyncpa [#allocation6], 1 }
 0x6d8   :  { %946 = vsyncpa [#allocation9], 1 }
 0x6d9   :  { %947 = vsyncpa [#allocation12], 1 }
 0x6da   :  { %948 = vsyncpa [#allocation4], 1 }

</bundles_post_ra>
